<compile_context>
chip_gen: v6e
topology: v6e:2x2x1
jax: 0.10.0
libtpu: 0.0.40
codegen_flags: <defaults>
</compile_context>

<pallas_src>
import jax
import jax.numpy as jnp
from jax.experimental import pallas as pl
from jax.experimental.pallas import tpu as pltpu

N, CIN, H, W = 2, 4, 16, 16   # batch, in-channels, spatial
COUT = 32                     # embedding feature dim
NCLS = 10                     # classifier output dim
KH = KW = 3                   # conv kernel

M = N * H * W                 # 512 im2col rows (multiple of 8)
K = KH * KW * CIN             # 36  im2col contraction dim
K_PAD = 128                   # lane/contraction pad for the conv matmul
C_PAD = 128                   # lane pad for COUT
N_PAD = 8                     # sublane pad for the batch / logits tile
NCLS_PAD = 128                # lane pad for the logits


# ---------------- Fused Pallas kernel: 3 MXU matmuls + bias/ReLU ----------------

def distill_kernel(lhs_ref, cw_ref, cb_ref, pool_ref, fw_ref, fb_ref, o_ref):
    # lhs_ref : (M, K_PAD)        im2col patches, zero-padded K
    # cw_ref  : (K_PAD, C_PAD)    conv weight, zero-padded K and COUT
    # cb_ref  : (1, C_PAD)        conv bias, zero-padded
    # pool_ref: (N_PAD, M)        block-averaging matrix (entries 1/(H*W), zero pad rows)
    # fw_ref  : (C_PAD, NCLS_PAD) fc weight, zero-padded
    # fb_ref  : (1, NCLS_PAD)     fc bias, zero-padded
    # o_ref   : (N_PAD, NCLS_PAD) padded logits (full (8,128) tile -> unmasked store)

    # Conv3x3 as one lane-dense MXU matmul, fused bias + ReLU.
    acc = jnp.dot(lhs_ref[...], cw_ref[...],
                  preferred_element_type=jnp.float32)           # (M, C_PAD)
    acc = jnp.maximum(acc + cb_ref[...], 0.0)

    # Global average pool as a single MXU matmul (scale folded into pool_ref).
    feats = jnp.dot(pool_ref[...], acc,
                    preferred_element_type=jnp.float32)         # (N_PAD, C_PAD)

    # Fused classifier: single full-tile store of the logits.
    o_ref[...] = jnp.dot(feats, fw_ref[...],
                         preferred_element_type=jnp.float32) + fb_ref[...]


# ---------------- JAX glue (layout only, no FLOPs in-kernel duplicated) ----------------

def _im2col(xp):
    # xp: (N, H+2, W+2, CIN) SAME-padded NHWC.  [kh, kw, cin] ordering along K matches
    # conv_w.reshape(KH*KW*CIN, COUT) for HWIO conv weights.
    wins = [xp[:, kh:kh + H, kw:kw + W, :] for kh in range(KH) for kw in range(KW)]
    return jnp.concatenate(wins, axis=-1).reshape(M, K)          # (512, 36)


def distill_layer_forward(x_nchw, conv_w, conv_b, fc_w, fc_b):
    x = jnp.transpose(x_nchw, (0, 2, 3, 1)).astype(jnp.float32)  # NCHW -> NHWC
    xp = jnp.pad(x, ((0, 0), (1, 1), (1, 1), (0, 0)))            # SAME pad

    lhs = jnp.pad(_im2col(xp), ((0, 0), (0, K_PAD - K)))          # (512, 128)
    cw = jnp.pad(conv_w.reshape(K, COUT).astype(jnp.float32),
                 ((0, K_PAD - K), (0, C_PAD - COUT)))             # (128, 128)
    cb = jnp.pad(conv_b.reshape(1, COUT).astype(jnp.float32),
                 ((0, 0), (0, C_PAD - COUT)))                     # (1, 128)

    # Block-averaging matrix: row i sums (and scales by 1/(H*W)) image i's H*W rows.
    pool = jnp.zeros((N_PAD, M), jnp.float32)
    img_id = jnp.arange(M) // (H * W)                             # (512,)
    pool = pool.at[img_id, jnp.arange(M)].set(1.0 / (H * W))      # rows N..7 stay zero

    fw = jnp.pad(fc_w.astype(jnp.float32),
                 ((0, C_PAD - COUT), (0, NCLS_PAD - NCLS)))       # (128, 128)
    fb = jnp.pad(fc_b.reshape(1, NCLS).astype(jnp.float32),
                 ((0, 0), (0, NCLS_PAD - NCLS)))                  # (1, 128)

    flops = (2 * M * K_PAD * C_PAD           # conv matmul
             + 2 * M * C_PAD                 # bias + relu
             + 2 * N_PAD * M * C_PAD         # pooling matmul
             + 2 * N_PAD * C_PAD * NCLS_PAD)  # fc matmul
    bytes_accessed = 4 * (lhs.size + cw.size + cb.size + pool.size
                          + fw.size + fb.size + N_PAD * NCLS_PAD)

    logits_pad = pl.pallas_call(
        distill_kernel,
        out_shape=jax.ShapeDtypeStruct((N_PAD, NCLS_PAD), jnp.float32),
        in_specs=[pl.BlockSpec(memory_space=pltpu.MemorySpace.VMEM)] * 6,
        out_specs=pl.BlockSpec(memory_space=pltpu.MemorySpace.VMEM),
        cost_estimate=pl.CostEstimate(flops=flops, transcendentals=0,
                                      bytes_accessed=bytes_accessed),
    )(lhs, cw, cb, pool, fw, fb)
    return logits_pad[:N, :NCLS]


def reference_forward(x_nchw, conv_w, conv_b, fc_w, fc_b):
    x = jnp.transpose(x_nchw, (0, 2, 3, 1)).astype(jnp.float32)
    y = jax.lax.conv_general_dilated(
        x, conv_w, window_strides=(1, 1), padding="SAME",
        dimension_numbers=("NHWC", "HWIO", "NHWC"))
    y = jnp.maximum(y + conv_b, 0.0)
    f = jnp.mean(y, axis=(1, 2))
    return f @ fc_w + fc_b


if __name__ == "__main__":
    key = jax.random.PRNGKey(0)
    kx, kw1, kb1, kw2, kb2 = jax.random.split(key, 5)

    x = jax.random.normal(kx, (N, CIN, H, W), dtype=jnp.float32)     # NCHW like PyTorch
    # Deterministic parameter init (Conv2d 3x3 CIN->COUT, Linear COUT->NCLS)
    conv_w = jax.random.normal(kw1, (KH, KW, CIN, COUT), jnp.float32) * (2.0 / (KH * KW * CIN)) ** 0.5
    conv_b = jax.random.normal(kb1, (COUT,), jnp.float32) * 0.02
    fc_w = jax.random.normal(kw2, (COUT, NCLS), jnp.float32) * (1.0 / COUT) ** 0.5
    fc_b = jax.random.normal(kb2, (NCLS,), jnp.float32) * 0.02

    out = distill_layer_forward(x, conv_w, conv_b, fc_w, fc_b)
    out = jax.block_until_ready(out)

    ref = reference_forward(x, conv_w, conv_b, fc_w, fc_b)
    assert out.shape == (N, NCLS)
    assert jnp.allclose(out, ref, rtol=1e-3, atol=1e-3), "mismatch vs JAX reference"

    print("KERNEL_OK")
</pallas_src>

<mosaic_0001>
module attributes {stable_mosaic.version = 11 : i64} {
  func.func @distill_kernel(%arg0: memref<512x128xf32, #tpu.memory_space<vmem>>, %arg1: memref<128x128xf32, #tpu.memory_space<vmem>>, %arg2: memref<1x128xf32, #tpu.memory_space<vmem>>, %arg3: memref<8x512xf32, #tpu.memory_space<vmem>>, %arg4: memref<128x128xf32, #tpu.memory_space<vmem>>, %arg5: memref<1x128xf32, #tpu.memory_space<vmem>>, %arg6: memref<8x128xf32, #tpu.memory_space<vmem>>) attributes {dimension_semantics = [], scalar_prefetch = 0 : i64, scratch_operands = 0 : i64, tpu.core_type = #tpu.core_type<tc>} {
    %c0 = arith.constant 0 : index
    %c0_0 = arith.constant 0 : index
    %0 = vector.load %arg0[%c0, %c0_0] : memref<512x128xf32, #tpu.memory_space<vmem>>, vector<512x128xf32>
    %c0_1 = arith.constant 0 : index
    %c0_2 = arith.constant 0 : index
    %1 = vector.load %arg1[%c0_1, %c0_2] : memref<128x128xf32, #tpu.memory_space<vmem>>, vector<128x128xf32>
    %cst = arith.constant dense<0.000000e+00> : vector<512x128xf32>
    %2 = tpu.matmul %0, %1, %cst {dimension_numbers = #tpu.dot_dimension_numbers<[1], [0], [0], [1], [0, 0, 1, 1], [], []>} : vector<512x128xf32>, vector<128x128xf32>, vector<512x128xf32> -> vector<512x128xf32>
    %c0_3 = arith.constant 0 : index
    %c0_4 = arith.constant 0 : index
    %3 = vector.load %arg2[%c0_3, %c0_4] : memref<1x128xf32, #tpu.memory_space<vmem>>, vector<1x128xf32>
    %4 = vector.broadcast %3 : vector<1x128xf32> to vector<512x128xf32>
    %5 = arith.addf %2, %4 : vector<512x128xf32>
    %cst_5 = arith.constant 0.000000e+00 : f32
    %6 = vector.broadcast %cst_5 : f32 to vector<512x128xf32>
    %7 = arith.maximumf %5, %6 : vector<512x128xf32>
    %c0_6 = arith.constant 0 : index
    %c0_7 = arith.constant 0 : index
    %8 = vector.load %arg3[%c0_6, %c0_7] : memref<8x512xf32, #tpu.memory_space<vmem>>, vector<8x512xf32>
    %cst_8 = arith.constant dense<0.000000e+00> : vector<8x128xf32>
    %9 = tpu.matmul %8, %7, %cst_8 {dimension_numbers = #tpu.dot_dimension_numbers<[1], [0], [0], [1], [0, 0, 1, 1], [], []>} : vector<8x512xf32>, vector<512x128xf32>, vector<8x128xf32> -> vector<8x128xf32>
    %c0_9 = arith.constant 0 : index
    %c0_10 = arith.constant 0 : index
    %10 = vector.load %arg4[%c0_9, %c0_10] : memref<128x128xf32, #tpu.memory_space<vmem>>, vector<128x128xf32>
    %cst_11 = arith.constant dense<0.000000e+00> : vector<8x128xf32>
    %11 = tpu.matmul %9, %10, %cst_11 {dimension_numbers = #tpu.dot_dimension_numbers<[1], [0], [0], [1], [0, 0, 1, 1], [], []>} : vector<8x128xf32>, vector<128x128xf32>, vector<8x128xf32> -> vector<8x128xf32>
    %c0_12 = arith.constant 0 : index
    %c0_13 = arith.constant 0 : index
    %12 = vector.load %arg5[%c0_12, %c0_13] : memref<1x128xf32, #tpu.memory_space<vmem>>, vector<1x128xf32>
    %13 = vector.broadcast %12 : vector<1x128xf32> to vector<8x128xf32>
    %14 = arith.addf %11, %13 : vector<8x128xf32>
    %c0_14 = arith.constant 0 : index
    %c0_15 = arith.constant 0 : index
    %15 = vector.load %arg6[%c0_14, %c0_15] : memref<8x128xf32, #tpu.memory_space<vmem>>, vector<8x128xf32>
    tpu.vector_store %arg6[%c0_14, %c0_15], %14 {strides = array<i32>} : memref<8x128xf32, #tpu.memory_space<vmem>>, vector<8x128xf32>,
    return
  }
}

</mosaic_0001>

<bundles_post_ra>
// kernel: tpu_custom_call.1
= control target key start
LH: loop header
LB: loop body
LE: loop exit
PB: predicated region body
PF: predicated region fallthrough
CT: control target
= control target key end

     0   :  { %11 = vsyncpa [#allocation3], 0  ;;  %s1553_s0 = inlined_call_operand.hbm [shape: f32[512,128], index: 0, kind: input, shape index: {}]   ;;  %s1554_s1 = inlined_call_operand.hbm [shape: f32[128,128], index: 1, kind: input, shape index: {}]   ;;  %s1555_s2 = inlined_call_operand.vmem [shape: f32[1,128], index: 2, kind: input, shape index: {}]   ;;  %s1556_s3 = inlined_call_operand.hbm [shape: f32[8,512], index: 3, kind: input, shape index: {}]   ;;  %s1557_s4 = inlined_call_operand.hbm [shape: f32[128,128], index: 4, kind: input, shape index: {}]   ;;  %s1558_s5 = inlined_call_operand.vmem [shape: f32[1,128], index: 5, kind: input, shape index: {}]   ;;  %s1559_s6 = inlined_call_operand.hbm [shape: f32[8,128], index: 6, kind: output, shape index: {}]  }
   0x1   :  { %12 = vsyncpa [#allocation6], 0 }
   0x2   :  { %13 = vsyncpa [#allocation9], 0 }
   0x3   :  { %14 = vsyncpa [#allocation4], 0  ;;  %s1317_s21 = smov [#allocation5]   ;;  %s1318_s23 = smov [#allocation2]  }
   0x4   :  { %s32_s22 = sshll.u32 %s1317_s21, 4  ;;  %s20_s24 = sshll.u32 %s1318_s23, 4  ;;  %s33_s22 = int_to_ptr.vmem [resolvable:$true] %s32_s22  ;;  %s21_s24 = int_to_ptr.vmem [resolvable:$true] %s20_s24 }
   0x5   :  { %s1217_s25 = scalar_lea.vmem %s33_s22, 2048  ;;  %p1222_p1 = scmp.lt.s32.totalorder %s33_s22, %s33_s22 }
   0x6   :  { %p1218_p0 = scmp.ne.s32.totalorder %s33_s22, %s1217_s25  ;;  %p1223_p2 = scmp.lt.s32.totalorder %s1217_s25, %s1217_s25 }
   0x8   :  { %p1224_p3 = por %p1223_p2, %p1222_p1 }
   0xa   :  { %p1225_p4 = pnand %p1224_p3, %p1218_p0 }
   0xc   :  { %1228 = shalt.err (!%p1225_p4)
}
   0xd   :  { %s1319_s26 = smov 128   ;;  %s1320_s27 = smov 8  }
   0xe   :  { %38 = dma.hbm_to_vmem [thread:$0]  %s1554_s1, 2048, %s33_s22, [#allocation6], %s1319_s26, %s1319_s26, %s1320_s27  }
   0xf   :  { %s1237_s30 = scalar_lea.vmem %s21_s24, 8192  ;;  %p1242_p6 = scmp.lt.s32.totalorder %s21_s24, %s21_s24 }
  0x10   :  { %p1238_p5 = scmp.ne.s32.totalorder %s21_s24, %s1237_s30  ;;  %p1243_p7 = scmp.lt.s32.totalorder %s1237_s30, %s1237_s30 }
  0x12   :  { %p1244_p8 = por %p1243_p7, %p1242_p6 }
  0x14   :  { %p1245_p9 = pnand %p1244_p8, %p1238_p5 }
  0x16   :  { %1248 = shalt.err (!%p1245_p9)
}
  0x17   :  { %26 = dma.hbm_to_vmem [thread:$0]  %s1553_s0, 8192, %s21_s24, [#allocation3], %s1319_s26, %s1319_s26, %s1320_s27  }
  0x18   :  { %s1321_s9 = smov [#allocation7]   ;;  %s1322_s11 = smov [#allocation8]  }
  0x19   :  { %s47_s10 = sshll.u32 %s1321_s9, 4  ;;  %s56_s12 = sshll.u32 %s1322_s11, 4  ;;  %s48_s10 = int_to_ptr.vmem [resolvable:$true] %s47_s10  ;;  %s57_s12 = int_to_ptr.vmem [resolvable:$true] %s56_s12 }
  0x1a   :  { %s1257_s1 = scalar_lea.vmem %s48_s10, 512  ;;  %p1262_p11 = scmp.lt.s32.totalorder %s48_s10, %s48_s10 }
  0x1b   :  { %p1258_p10 = scmp.ne.s32.totalorder %s48_s10, %s1257_s1  ;;  %p1263_p12 = scmp.lt.s32.totalorder %s1257_s1, %s1257_s1 }
  0x1d   :  { %p1264_p13 = por %p1263_p12, %p1262_p11 }
  0x1f   :  { %p1265_p0 = pnand %p1264_p13, %p1258_p10 }
  0x21   :  { %1268 = shalt.err (!%p1265_p0)
}
  0x22   :  { %50 = dma.hbm_to_vmem [thread:$0]  %s1556_s3, 512, %s48_s10, [#allocation6]  }
  0x23   :  { %s1277_s15 = scalar_lea.vmem %s57_s12, 2048  ;;  %p1282_p2 = scmp.lt.s32.totalorder %s57_s12, %s57_s12 }
  0x24   :  { %p1278_p1 = scmp.ne.s32.totalorder %s57_s12, %s1277_s15  ;;  %p1283_p3 = scmp.lt.s32.totalorder %s1277_s15, %s1277_s15 }
  0x26   :  { %p1284_p4 = por %p1283_p3, %p1282_p2 }
  0x28   :  { %p1285_p5 = pnand %p1284_p4, %p1278_p1 }
  0x2a   :  { %1288 = shalt.err (!%p1285_p5)
}
  0x2b   :  { %62 = dma.hbm_to_vmem [thread:$0]  %s1557_s4, 2048, %s57_s12, [#allocation9], %s1319_s26, %s1319_s26, %s1320_s27  }
  0x2c   :  { %1309 = dma.done.wait [#allocation3], 8192  }
  0x2d   :  { %1310 = vsyncadd [#allocation3], 4294959104 }
  0x2e   :  { %1311 = dma.done.wait [#allocation6], 2560  }
  0x2f   :  { %1312 = vsyncadd [#allocation6], 4294964736 }
  0x30   :  { %1313 = dma.done.wait [#allocation9], 2048  }
  0x31   :  { %1314 = vsyncadd [#allocation9], 4294965248  ;;  %v156_v0 = vld [vmem:[#allocation5 + $0x78] sm:$0xff]  ;;  %v155_v1 = vld [vmem:[#allocation5 + $0x70] sm:$0xff]  ;;  %vm1324_vm0 = vmmov 0   ;;  %s1325_s18 = smov [#allocation10]  }
  0x32   :  { %1037 = vmatprep.subr.mxu0 %v156_v0  ;;  %v154_v2 = vld [vmem:[#allocation5 + $0x68] sm:$0xff]  ;;  %v153_v3 = vld [vmem:[#allocation5 + $0x60] sm:$0xff]  ;;  %v152_v5 = vld [vmem:[#allocation5 + $0x58] sm:$0xff]  ;;  %s857_s19 = sshll.u32 %s1325_s18, 4  ;;  %s858_s19 = int_to_ptr.vmem [resolvable:$true] %s857_s19 }
  0x33   :  { %1038 = vmatpush3.msra.mxu0 %v156_v0  ;;  %v77_v4 = vld [vmem:[#allocation2] sm:$0xff]  ;;  %v151_v6 = vld [vmem:[#allocation5 + $0x50] sm:$0xff]  ;;  %v150_v7 = vld [vmem:[#allocation5 + $0x48] sm:$0xff]  ;;  %s1289_s20 = scalar_lea.vmem %s858_s19, 128  ;;  %p1294_p7 = scmp.lt.s32.totalorder %s858_s19, %s858_s19 }
  0x34   :  { %1039 = vmatprep.subr.mxu0 %v155_v1  ;;  %1069 = vmatprep.mubr.f32.mxu0 %v77_v4  ;;  %v149_v8 = vld [vmem:[#allocation5 + $0x40] sm:$0xff]  ;;  %v148_v9 = vld [vmem:[#allocation5 + $0x38] sm:$0xff]  ;;  %v147_v10 = vld [vmem:[#allocation5 + $0x30] sm:$0xff]  ;;  %p1290_p6 = scmp.ne.s32.totalorder %s858_s19, %s1289_s20  ;;  %p1295_p8 = scmp.lt.s32.totalorder %s1289_s20, %s1289_s20 }
  0x35   :  { %1040 = vmatpush3.msra.mxu0 %v155_v1  ;;  %v146_v11 = vld [vmem:[#allocation5 + $0x28] sm:$0xff]  ;;  %v145_v12 = vld [vmem:[#allocation5 + $0x20] sm:$0xff]  ;;  %v144_v13 = vld [vmem:[#allocation5 + $0x18] sm:$0xff] }
  0x36   :  { %1041 = vmatprep.subr.mxu0 %v154_v2  ;;  %v143_v14 = vld [vmem:[#allocation5 + $0x10] sm:$0xff]  ;;  %v142_v15 = vld [vmem:[#allocation5 + $0x8] sm:$0xff]  ;;  %v141_v16 = vld [vmem:[#allocation5] sm:$0xff]  ;;  %p1296_p9 = por %p1295_p8, %p1294_p7 }
  0x37   :  { %1042 = vmatpush3.msra.mxu0 %v154_v2  ;;  %v78_v17 = vld [vmem:[#allocation2 + $0x8] sm:$0xff]  ;;  %v79_v18 = vld [vmem:[#allocation2 + $0x10] sm:$0xff]  ;;  %v80_v19 = vld [vmem:[#allocation2 + $0x18] sm:$0xff] }
  0x38   :  { %1043 = vmatprep.subr.mxu0 %v153_v3  ;;  %v81_v20 = vld [vmem:[#allocation2 + $0x20] sm:$0xff]  ;;  %v82_v21 = vld [vmem:[#allocation2 + $0x28] sm:$0xff]  ;;  %v83_v22 = vld [vmem:[#allocation2 + $0x30] sm:$0xff]  ;;  %p1297_p10 = pnand %p1296_p9, %p1290_p6 }
  0x39   :  { %1044 = vmatpush3.msra.mxu0 %v153_v3  ;;  %v84_v23 = vld [vmem:[#allocation2 + $0x38] sm:$0xff]  ;;  %v85_v24 = vld [vmem:[#allocation2 + $0x40] sm:$0xff]  ;;  %v86_v25 = vld [vmem:[#allocation2 + $0x48] sm:$0xff] }
  0x3a   :  { %1045 = vmatprep.subr.mxu0 %v152_v5  ;;  %v87_v26 = vld [vmem:[#allocation2 + $0x50] sm:$0xff]  ;;  %v88_v27 = vld [vmem:[#allocation2 + $0x58] sm:$0xff]  ;;  %v89_v28 = vld [vmem:[#allocation2 + $0x60] sm:$0xff] }
  0x3b   :  { %1046 = vmatpush3.msra.mxu0 %v152_v5  ;;  %v90_v29 = vld [vmem:[#allocation2 + $0x68] sm:$0xff]  ;;  %v91_v30 = vld [vmem:[#allocation2 + $0x70] sm:$0xff]  ;;  %v92_v31 = vld [vmem:[#allocation2 + $0x78] sm:$0xff] }
  0x3c   :  { %1047 = vmatprep.subr.mxu0 %v151_v6  ;;  %v93_v32 = vld [vmem:[#allocation2 + $0x80] sm:$0xff]  ;;  %v94_v33 = vld [vmem:[#allocation2 + $0x88] sm:$0xff]  ;;  %v95_v34 = vld [vmem:[#allocation2 + $0x90] sm:$0xff] }
  0x3d   :  { %1048 = vmatpush3.msra.mxu0 %v151_v6  ;;  %v96_v35 = vld [vmem:[#allocation2 + $0x98] sm:$0xff]  ;;  %v97_v36 = vld [vmem:[#allocation2 + $0xa0] sm:$0xff]  ;;  %v98_v37 = vld [vmem:[#allocation2 + $0xa8] sm:$0xff] }
  0x3e   :  { %1049 = vmatprep.subr.mxu0 %v150_v7  ;;  %v99_v38 = vld [vmem:[#allocation2 + $0xb0] sm:$0xff]  ;;  %v100_v39 = vld [vmem:[#allocation2 + $0xb8] sm:$0xff]  ;;  %v101_v40 = vld [vmem:[#allocation2 + $0xc0] sm:$0xff] }
  0x3f   :  { %1050 = vmatpush3.msra.mxu0 %v150_v7  ;;  %v102_v41 = vld [vmem:[#allocation2 + $0xc8] sm:$0xff]  ;;  %v103_v42 = vld [vmem:[#allocation2 + $0xd0] sm:$0xff]  ;;  %v104_v43 = vld [vmem:[#allocation2 + $0xd8] sm:$0xff] }
  0x40   :  { %1051 = vmatprep.subr.mxu0 %v149_v8  ;;  %v105_v44 = vld [vmem:[#allocation2 + $0xe0] sm:$0xff]  ;;  %v106_v45 = vld [vmem:[#allocation2 + $0xe8] sm:$0xff]  ;;  %v107_v46 = vld [vmem:[#allocation2 + $0xf0] sm:$0xff] }
  0x41   :  { %1052 = vmatpush3.msra.mxu0 %v149_v8  ;;  %v108_v47 = vld [vmem:[#allocation2 + $0xf8] sm:$0xff]  ;;  %v109_v48 = vld [vmem:[#allocation2 + $0x100] sm:$0xff]  ;;  %v110_v49 = vld [vmem:[#allocation2 + $0x108] sm:$0xff] }
  0x42   :  { %1053 = vmatprep.subr.mxu0 %v148_v9  ;;  %v111_v50 = vld [vmem:[#allocation2 + $0x110] sm:$0xff]  ;;  %v112_v51 = vld [vmem:[#allocation2 + $0x118] sm:$0xff]  ;;  %v113_v52 = vld [vmem:[#allocation2 + $0x120] sm:$0xff] }
  0x43   :  { %1054 = vmatpush3.msra.mxu0 %v148_v9  ;;  %v114_v53 = vld [vmem:[#allocation2 + $0x128] sm:$0xff]  ;;  %v115_v54 = vld [vmem:[#allocation2 + $0x130] sm:$0xff]  ;;  %v116_v55 = vld [vmem:[#allocation2 + $0x138] sm:$0xff] }
  0x44   :  { %1055 = vmatprep.subr.mxu0 %v147_v10  ;;  %v117_v56 = vld [vmem:[#allocation2 + $0x140] sm:$0xff]  ;;  %v118_v57 = vld [vmem:[#allocation2 + $0x148] sm:$0xff]  ;;  %v119_v58 = vld [vmem:[#allocation2 + $0x150] sm:$0xff] }
  0x45   :  { %1056 = vmatpush3.msra.mxu0 %v147_v10  ;;  %v120_v59 = vld [vmem:[#allocation2 + $0x158] sm:$0xff]  ;;  %v121_v60 = vld [vmem:[#allocation2 + $0x160] sm:$0xff]  ;;  %v122_v61 = vld [vmem:[#allocation2 + $0x168] sm:$0xff] }
  0x46   :  { %1057 = vmatprep.subr.mxu0 %v146_v11  ;;  %v123_v62 = vld [vmem:[#allocation2 + $0x170] sm:$0xff]  ;;  %v124_v63 = vld [vmem:[#allocation2 + $0x178] sm:$0xff]  ;;  %v125_v0 = vld [vmem:[#allocation2 + $0x180] sm:$0xff] }
  0x47   :  { %1058 = vmatpush3.msra.mxu0 %v146_v11  ;;  %v126_v1 = vld [vmem:[#allocation2 + $0x188] sm:$0xff]  ;;  %v127_v2 = vld [vmem:[#allocation2 + $0x190] sm:$0xff]  ;;  %v128_v3 = vld [vmem:[#allocation2 + $0x198] sm:$0xff] }
  0x48   :  { %1059 = vmatprep.subr.mxu0 %v145_v12  ;;  %v129_v4 = vld [vmem:[#allocation2 + $0x1a0] sm:$0xff]  ;;  %v130_v5 = vld [vmem:[#allocation2 + $0x1a8] sm:$0xff]  ;;  %v131_v6 = vld [vmem:[#allocation2 + $0x1b0] sm:$0xff] }
  0x49   :  { %1060 = vmatpush3.msra.mxu0 %v145_v12  ;;  %v132_v7 = vld [vmem:[#allocation2 + $0x1b8] sm:$0xff]  ;;  %v133_v8 = vld [vmem:[#allocation2 + $0x1c0] sm:$0xff]  ;;  %v134_v9 = vld [vmem:[#allocation2 + $0x1c8] sm:$0xff] }
  0x4a   :  { %1061 = vmatprep.subr.mxu0 %v144_v13  ;;  %v135_v10 = vld [vmem:[#allocation2 + $0x1d0] sm:$0xff]  ;;  %v136_v11 = vld [vmem:[#allocation2 + $0x1d8] sm:$0xff]  ;;  %v137_v12 = vld [vmem:[#allocation2 + $0x1e0] sm:$0xff] }
  0x4b   :  { %1062 = vmatpush3.msra.mxu0 %v144_v13  ;;  %v138_v13 = vld [vmem:[#allocation2 + $0x1e8] sm:$0xff] }
  0x4c   :  { %1063 = vmatprep.subr.mxu0 %v143_v14 }
  0x4d   :  { %1064 = vmatpush3.msra.mxu0 %v143_v14  ;;  %v139_v14 = vld [vmem:[#allocation2 + $0x1f0] sm:$0xff] }
  0x4e   :  { %1065 = vmatprep.subr.mxu0 %v142_v15 }
  0x4f   :  { %1066 = vmatpush3.msra.mxu0 %v142_v15  ;;  %v140_v15 = vld [vmem:[#allocation2 + $0x1f8] sm:$0xff] }
  0x50   :  { %1067 = vmatprep.subr.mxu0 %v141_v16 }
  0x51   :  { %1068 = vmatpush3.msra.mxu0 %v141_v16  ;;  %v614_v16 = vld [vmem:[#allocation7 + $0x8] sm:$0xff] }
  0x52   :  { %1070 = vmatmul.mubr.f32.vlgmr.msra.gmra.mxu0 %v78_v17  ;;  %681 = vmatprep.mubr.f32.mxu1 %v614_v16 }
  0x53   :  { %1072 = vmatprep.mubr.f32.mxu0 %v79_v18 }
  0x56   :  { %1073 = vmatmul.mubr.f32.gmra.mxu0 %v80_v19 }
  0x57   :  { %1075 = vmatprep.mubr.f32.mxu0 %v81_v20 }
  0x5a   :  { %1076 = vmatmul.mubr.f32.gmra.mxu0 %v82_v21 }
  0x5b   :  { %1078 = vmatprep.mubr.f32.mxu0 %v83_v22 }
  0x5e   :  { %1079 = vmatmul.mubr.f32.gmra.mxu0 %v84_v23 }
  0x5f   :  { %1081 = vmatprep.mubr.f32.mxu0 %v85_v24 }
  0x62   :  { %1082 = vmatmul.mubr.f32.gmra.mxu0 %v86_v25 }
  0x63   :  { %1084 = vmatprep.mubr.f32.mxu0 %v87_v26 }
  0x66   :  { %1085 = vmatmul.mubr.f32.gmra.mxu0 %v88_v27 }
  0x67   :  { %1087 = vmatprep.mubr.f32.mxu0 %v89_v28 }
  0x6a   :  { %1088 = vmatmul.mubr.f32.gmra.mxu0 %v90_v29 }
  0x6b   :  { %1090 = vmatprep.mubr.f32.mxu0 %v91_v30 }
  0x6e   :  { %1091 = vmatmul.mubr.f32.gmra.mxu0 %v92_v31 }
  0x6f   :  { %1093 = vmatprep.mubr.f32.mxu0 %v93_v32 }
  0x72   :  { %1094 = vmatmul.mubr.f32.gmra.mxu0 %v94_v33 }
  0x73   :  { %1096 = vmatprep.mubr.f32.mxu0 %v95_v34 }
  0x76   :  { %1097 = vmatmul.mubr.f32.gmra.mxu0 %v96_v35 }
  0x77   :  { %1099 = vmatprep.mubr.f32.mxu0 %v97_v36 }
  0x7a   :  { %1100 = vmatmul.mubr.f32.gmra.mxu0 %v98_v37 }
  0x7b   :  { %1102 = vmatprep.mubr.f32.mxu0 %v99_v38 }
  0x7e   :  { %1103 = vmatmul.mubr.f32.gmra.mxu0 %v100_v39 }
  0x7f   :  { %1105 = vmatprep.mubr.f32.mxu0 %v101_v40 }
  0x82   :  { %1106 = vmatmul.mubr.f32.gmra.mxu0 %v102_v41 }
  0x83   :  { %1108 = vmatprep.mubr.f32.mxu0 %v103_v42 }
  0x86   :  { %1109 = vmatmul.mubr.f32.gmra.mxu0 %v104_v43 }
  0x87   :  { %1111 = vmatprep.mubr.f32.mxu0 %v105_v44 }
  0x8a   :  { %1112 = vmatmul.mubr.f32.gmra.mxu0 %v106_v45 }
  0x8b   :  { %1114 = vmatprep.mubr.f32.mxu0 %v107_v46 }
  0x8e   :  { %1115 = vmatmul.mubr.f32.gmra.mxu0 %v108_v47  ;;  %v1415_v47 = vld [vmem:[%s1555_s2] ss:$0 sm:$0xff] }
  0x8f   :  { %1117 = vmatprep.mubr.f32.mxu0 %v109_v48 }
  0x92   :  { %1118 = vmatmul.mubr.f32.gmra.mxu0 %v110_v49 }
  0x93   :  { %1120 = vmatprep.mubr.f32.mxu0 %v111_v50 }
  0x96   :  { %1121 = vmatmul.mubr.f32.gmra.mxu0 %v112_v51 }
  0x97   :  { %1123 = vmatprep.mubr.f32.mxu0 %v113_v52 }
  0x9a   :  { %1124 = vmatmul.mubr.f32.gmra.mxu0 %v114_v53 }
  0x9b   :  { %1126 = vmatprep.mubr.f32.mxu0 %v115_v54 }
  0x9e   :  { %1127 = vmatmul.mubr.f32.gmra.mxu0 %v116_v55 }
  0x9f   :  { %1129 = vmatprep.mubr.f32.mxu0 %v117_v56 }
  0xa2   :  { %1130 = vmatmul.mubr.f32.gmra.mxu0 %v118_v57 }
  0xa3   :  { %1132 = vmatprep.mubr.f32.mxu0 %v119_v58 }
  0xa6   :  { %1133 = vmatmul.mubr.f32.gmra.mxu0 %v120_v59 }
  0xa7   :  { %1135 = vmatprep.mubr.f32.mxu0 %v121_v60 }
  0xaa   :  { %1136 = vmatmul.mubr.f32.gmra.mxu0 %v122_v61 }
  0xab   :  { %1138 = vmatprep.mubr.f32.mxu0 %v123_v62 }
  0xae   :  { %1139 = vmatmul.mubr.f32.gmra.mxu0 %v124_v63 }
  0xaf   :  { %1141 = vmatprep.mubr.f32.mxu0 %v125_v0 }
  0xb2   :  { %1142 = vmatmul.mubr.f32.gmra.mxu0 %v126_v1 }
  0xb3   :  { %1144 = vmatprep.mubr.f32.mxu0 %v127_v2 }
  0xb6   :  { %1145 = vmatmul.mubr.f32.gmra.mxu0 %v128_v3 }
  0xb7   :  { %1147 = vmatprep.mubr.f32.mxu0 %v129_v4 }
  0xba   :  { %1148 = vmatmul.mubr.f32.gmra.mxu0 %v130_v5 }
  0xbb   :  { %1150 = vmatprep.mubr.f32.mxu0 %v131_v6 }
  0xbe   :  { %1151 = vmatmul.mubr.f32.gmra.mxu0 %v132_v7 }
  0xbf   :  { %1153 = vmatprep.mubr.f32.mxu0 %v133_v8 }
  0xc2   :  { %1154 = vmatmul.mubr.f32.gmra.mxu0 %v134_v9 }
  0xc3   :  { %1156 = vmatprep.mubr.f32.mxu0 %v135_v10 }
  0xc6   :  { %1157 = vmatmul.mubr.f32.gmra.mxu0 %v136_v11 }
  0xc7   :  { %1159 = vmatprep.mubr.f32.mxu0 %v137_v12 }
  0xca   :  { %1160 = vmatmul.mubr.f32.gmra.mxu0 %v138_v13 }
  0xcb   :  { %1162 = vmatprep.mubr.f32.mxu0 %v139_v14 }
  0xce   :  { %1163 = vmatmul.mubr.f32.gmra.mxu0 %v140_v15 }
 0x112   :  { %v1382_v17 = vpop.f32.mrf.mxu0 }
 0x114   :  { %v1384_v18 = vpop.f32.mrf.mxu0 }
 0x116   :  { %v1386_v19 = vpop.f32.mrf.mxu0 }
 0x118   :  { %v1388_v20 = vpop.f32.mrf.mxu0 }
 0x11a   :  { %v1390_v21 = vpop.f32.mrf.mxu0 }
 0x11c   :  { %v1392_v22 = vpop.f32.mrf.mxu0 }
 0x11e   :  { %v1394_v23 = vpop.f32.mrf.mxu0 }
 0x120   :  { %v1396_v24 = vpop.f32.mrf.mxu0 }
 0x122   :  { %v1083_v25 = vpop.f32.mrf.mxu0 }
 0x123   :  { %v276_v12 = vadd.f32 %v1083_v25, %v1415_v47  ;;  %v266_v25 = vadd.f32 %v1394_v23, %v1415_v47  ;;  %v256_v23 = vadd.f32 %v1390_v21, %v1415_v47 }
 0x124   :  { %v1398_v26 = vpop.f32.mrf.mxu0 }
 0x126   :  { %v1086_v27 = vpop.f32.mrf.mxu0 }
 0x127   :  { %v286_v2 = vadd.f32 %v1086_v27, %v1415_v47  ;;  %v271_v27 = vadd.f32 %v1415_v47, %v1398_v26  ;;  %v261_v26 = vadd.f32 %v1415_v47, %v1396_v24 }
 0x128   :  { %v280_v28 = vpop.f32.mrf.mxu0 }
 0x129   :  { %v281_v7 = vadd.f32 %v1415_v47, %v280_v28  ;;  %v560_v13 = vmax.f32 %v286_v2, 0.0 }
 0x12a   :  { %v1089_v29 = vpop.f32.mrf.mxu0 }
 0x12b   :  { %v296_v56 = vadd.f32 %v1089_v29, %v1415_v47  ;;  %v559_v28 = vmax.f32 %v281_v7, 0.0 }
 0x12c   :  { %v290_v30 = vpop.f32.mrf.mxu0 }
 0x12d   :  { %v291_v61 = vadd.f32 %v1415_v47, %v290_v30  ;;  %v562_v3 = vmax.f32 %v296_v56, 0.0  ;;  %v241_v56 = vadd.f32 %v1415_v47, %v1388_v20  ;;  %v231_v20 = vadd.f32 %v1415_v47, %v1384_v18 }
 0x12e   :  { %v1092_v31 = vpop.f32.mrf.mxu0 }
 0x12f   :  { %v306_v48 = vadd.f32 %v1092_v31, %v1415_v47  ;;  %v561_v8 = vmax.f32 %v291_v61, 0.0 }
 0x130   :  { %v300_v32 = vpop.f32.mrf.mxu0 }
 0x131   :  { %v301_v51 = vadd.f32 %v1415_v47, %v300_v32  ;;  %v564_v57 = vmax.f32 %v306_v48, 0.0  ;;  %v558_v32 = vmax.f32 %v276_v12, 0.0  ;;  %v556_v48 = vmax.f32 %v266_v25, 0.0 }
 0x132   :  { %v1400_v33 = vpop.f32.mrf.mxu0 }
 0x133   :  { %v563_v62 = vmax.f32 %v301_v51, 0.0  ;;  %v555_v51 = vmax.f32 %v261_v26, 0.0 }
 0x134   :  { %v1402_v34 = vpop.f32.mrf.mxu0 }
 0x136   :  { %v1404_v35 = vpop.f32.mrf.mxu0 }
 0x138   :  { %v1406_v36 = vpop.f32.mrf.mxu0 }
 0x13a   :  { %v1408_v37 = vpop.f32.mrf.mxu0 }
 0x13c   :  { %v1410_v38 = vpop.f32.mrf.mxu0 }
 0x13e   :  { %v1104_v39 = vpop.f32.mrf.mxu0 }
 0x13f   :  { %v346_v30 = vadd.f32 %v1104_v39, %v1415_v47  ;;  %v336_v39 = vadd.f32 %v1408_v37, %v1415_v47  ;;  %v326_v37 = vadd.f32 %v1404_v35, %v1415_v47  ;;  %v316_v35 = vadd.f32 %v1400_v33, %v1415_v47 }
 0x140   :  { %v340_v40 = vpop.f32.mrf.mxu0 }
 0x141   :  { %v570_v21 = vmax.f32 %v336_v39, 0.0  ;;  %v566_v33 = vmax.f32 %v316_v35, 0.0 }
 0x142   :  { %v1107_v41 = vpop.f32.mrf.mxu0 }
 0x143   :  { %v356_v10 = vadd.f32 %v1107_v41, %v1415_v47 }
 0x144   :  { %v350_v42 = vpop.f32.mrf.mxu0 }
 0x145   :  { %v351_v15 = vadd.f32 %v1415_v47, %v350_v42  ;;  %v574_v31 = vmax.f32 %v356_v10, 0.0  ;;  %v341_v42 = vadd.f32 %v1415_v47, %v340_v40  ;;  %v331_v40 = vadd.f32 %v1415_v47, %v1410_v38 }
 0x146   :  { %v1110_v43 = vpop.f32.mrf.mxu0  ;;  %v321_v38 = vadd.f32 %v1415_v47, %v1406_v36  ;;  %v311_v36 = vadd.f32 %v1415_v47, %v1402_v34  ;;  %v616_v34 = vld [vmem:[#allocation7 + $0x18] sm:$0xff] }
 0x147   :  { %v366_v0 = vadd.f32 %v1110_v43, %v1415_v47  ;;  %v573_v43 = vmax.f32 %v351_v15, 0.0  ;;  %v571_v24 = vmax.f32 %v341_v42, 0.0 }
 0x148   :  { %v360_v44 = vpop.f32.mrf.mxu0 }
 0x149   :  { %v361_v5 = vadd.f32 %v1415_v47, %v360_v44  ;;  %v576_v11 = vmax.f32 %v366_v0, 0.0  ;;  %v557_v44 = vmax.f32 %v271_v27, 0.0  ;;  %v567_v0 = vmax.f32 %v321_v38, 0.0 }
 0x14a   :  { %v1113_v45 = vpop.f32.mrf.mxu0 }
 0x14b   :  { %v376_v53 = vadd.f32 %v1113_v45, %v1415_v47  ;;  %v575_v16 = vmax.f32 %v361_v5, 0.0 }
 0x14c   :  { %v370_v46 = vpop.f32.mrf.mxu0 }
 0x14d   :  { %v371_v59 = vadd.f32 %v1415_v47, %v370_v46  ;;  %v578_v1 = vmax.f32 %v376_v53, 0.0  ;;  %v572_v46 = vmax.f32 %v346_v30, 0.0  ;;  %v246_v53 = vadd.f32 %v1386_v19, %v1415_v47 }
 0x14e   :  { %v1116_v49 = vpop.f32.mrf.mxu0  ;;  %v568_v19 = vmax.f32 %v326_v37, 0.0 }
 0x14f   :  { %v386_v50 = vadd.f32 %v1116_v49, %v1415_v47  ;;  %v577_v6 = vmax.f32 %v371_v59, 0.0  ;;  %v552_v61 = vmax.f32 %v246_v53, 0.0 }
 0x150   :  { %v380_v52 = vpop.f32.mrf.mxu0 }
 0x151   :  { %v381_v54 = vadd.f32 %v1415_v47, %v380_v52  ;;  %v580_v55 = vmax.f32 %v386_v50, 0.0  ;;  %v251_v50 = vadd.f32 %v1415_v47, %v1392_v22  ;;  %v569_v22 = vmax.f32 %v331_v40, 0.0 }
 0x152   :  { %v1423_v58 = vpop.f32.mrf.mxu0 }
 0x153   :  { %v579_v60 = vmax.f32 %v381_v54, 0.0  ;;  %950 = vmatprep.subr.mxu1 %v580_v55  ;;  %v554_v54 = vmax.f32 %v256_v23, 0.0 }
 0x154   :  { %v1427_v63 = vpop.f32.mrf.mxu0  ;;  %951 = vmatpush3.msra.mxu1 %v564_v57  ;;  %v553_v57 = vmax.f32 %v251_v50, 0.0 }
 0x155   :  { %952 = vmatprep.subr.mxu1 %v579_v60  ;;  %v236_v60 = vadd.f32 %v1382_v17, %v1415_v47  ;;  %v565_v17 = vmax.f32 %v311_v36, 0.0 }
 0x156   :  { %v1431_v4 = vpop.f32.mrf.mxu0  ;;  %953 = vmatpush3.msra.mxu1 %v563_v62 }
 0x157   :  { %954 = vmatprep.subr.mxu1 %v578_v1  ;;  %v551_v1 = vmax.f32 %v241_v56, 0.0 }
 0x158   :  { %v1435_v9 = vpop.f32.mrf.mxu0  ;;  %955 = vmatpush3.msra.mxu1 %v562_v3  ;;  %v550_v3 = vmax.f32 %v236_v60, 0.0 }
 0x159   :  { %956 = vmatprep.subr.mxu1 %v577_v6  ;;  %v549_v6 = vmax.f32 %v231_v20, 0.0 }
 0x15a   :  { %v1439_v14 = vpop.f32.mrf.mxu0  ;;  %957 = vmatpush3.msra.mxu1 %v561_v8  ;;  %v613_v8 = vld [vmem:[#allocation7] sm:$0xff] }
 0x15b   :  { %958 = vmatprep.subr.mxu1 %v576_v11 }
 0x15c   :  { %v1444_v29 = vpop.f32.mrf.mxu0  ;;  %959 = vmatpush3.msra.mxu1 %v560_v13 }
 0x15d   :  { %960 = vmatprep.subr.mxu1 %v575_v16 }
 0x15e   :  { %v1449_v41 = vpop.f32.mrf.mxu0  ;;  %961 = vmatpush3.msra.mxu1 %v559_v28 }
 0x15f   :  { %962 = vmatprep.subr.mxu1 %v574_v31 }
 0x160   :  { %v1454_v45 = vpop.f32.mrf.mxu0  ;;  %963 = vmatpush3.msra.mxu1 %v558_v32 }
 0x161   :  { %964 = vmatprep.subr.mxu1 %v573_v43 }
 0x162   :  { %v1460_v49 = vpop.f32.mrf.mxu0  ;;  %965 = vmatpush3.msra.mxu1 %v557_v44 }
 0x163   :  { %966 = vmatprep.subr.mxu1 %v572_v46  ;;  %v436_v36 = vadd.f32 %v1460_v49, %v1415_v47 }
 0x164   :  { %v1466_v52 = vpop.f32.mrf.mxu0  ;;  %967 = vmatpush3.msra.mxu1 %v556_v48 }
 0x165   :  { %968 = vmatprep.subr.mxu1 %v571_v24 }
 0x166   :  { %v1472_v55 = vpop.f32.mrf.mxu0  ;;  %969 = vmatpush3.msra.mxu1 %v555_v51 }
 0x167   :  { %970 = vmatprep.subr.mxu1 %v570_v21 }
 0x168   :  { %v1478_v59 = vpop.f32.mrf.mxu0  ;;  %971 = vmatpush3.msra.mxu1 %v554_v54 }
 0x169   :  { %972 = vmatprep.subr.mxu1 %v569_v22  ;;  %v446_v22 = vadd.f32 %v1472_v55, %v1415_v47 }
 0x16a   :  { %v1137_v62 = vpop.f32.mrf.mxu0  ;;  %973 = vmatpush3.msra.mxu1 %v553_v57 }
 0x16b   :  { %974 = vmatprep.subr.mxu1 %v568_v19  ;;  %v456_v24 = vadd.f32 %v1137_v62, %v1415_v47  ;;  %v441_v19 = vadd.f32 %v1415_v47, %v1478_v59 }
 0x16c   :  { %v450_v2 = vpop.f32.mrf.mxu0  ;;  %975 = vmatpush3.msra.mxu1 %v552_v61 }
 0x16d   :  { %976 = vmatprep.subr.mxu1 %v567_v0  ;;  %v451_v21 = vadd.f32 %v1415_v47, %v450_v2  ;;  %v594_v56 = vmax.f32 %v456_v24, 0.0  ;;  %v592_v0 = vmax.f32 %v446_v22, 0.0  ;;  %v591_v2 = vmax.f32 %v441_v19, 0.0  ;;  %v768_v24 = vld [vmem:[#allocation8 + $0x58] sm:$0xff] }
 0x16e   :  { %v1140_v5 = vpop.f32.mrf.mxu0  ;;  %977 = vmatpush3.msra.mxu1 %v551_v1  ;;  %v431_v1 = vadd.f32 %v1415_v47, %v1466_v52  ;;  %v760_v22 = vld [vmem:[#allocation8 + $0x18] sm:$0xff] }
 0x16f   :  { %978 = vmatprep.subr.mxu1 %v566_v33  ;;  %v466_v43 = vadd.f32 %v1140_v5, %v1415_v47  ;;  %v593_v60 = vmax.f32 %v451_v21, 0.0  ;;  %v590_v5 = vmax.f32 %v436_v36, 0.0  ;;  %v764_v21 = vld [vmem:[#allocation8 + $0x38] sm:$0xff] }
 0x170   :  { %v460_v7 = vpop.f32.mrf.mxu0  ;;  %979 = vmatpush3.msra.mxu1 %v550_v3  ;;  %v426_v3 = vadd.f32 %v1449_v41, %v1415_v47 }
 0x171   :  { %980 = vmatprep.subr.mxu1 %v565_v17  ;;  %v461_v39 = vadd.f32 %v1415_v47, %v460_v7  ;;  %v596_v50 = vmax.f32 %v466_v43, 0.0  ;;  %v589_v7 = vmax.f32 %v431_v1, 0.0 }
 0x172   :  { %v1488_v10 = vpop.f32.mrf.mxu0  ;;  %981 = vmatpush3.msra.mxu1 %v549_v6  ;;  %v421_v6 = vadd.f32 %v1415_v47, %v1454_v45 }
 0x173   :  { %682 = vmatmul.mubr.f32.vlgmr.msra.gmra.mxu1 %v613_v8  ;;  %v595_v53 = vmax.f32 %v461_v39, 0.0 }
 0x174   :  { %v1490_v18 = vpop.f32.mrf.mxu0  ;;  %751 = vmatprep.mubr.f32.mxu1 %v616_v34  ;;  %v416_v34 = vadd.f32 %v1439_v14, %v1415_v47  ;;  %v587_v45 = vmax.f32 %v421_v6, 0.0  ;;  %v406_v14 = vadd.f32 %v1431_v4, %v1415_v47  ;;  %v396_v4 = vadd.f32 %v1423_v58, %v1415_v47  ;;  %v615_v58 = vld [vmem:[#allocation7 + $0x10] sm:$0xff] }
 0x176   :  { %v1492_v11 = vpop.f32.mrf.mxu0  ;;  %v584_v43 = vmax.f32 %v406_v14, 0.0 }
 0x178   :  { %v1494_v12 = vpop.f32.mrf.mxu0 }
 0x17a   :  { %v1149_v13 = vpop.f32.mrf.mxu0 }
 0x17b   :  { %v496_v52 = vadd.f32 %v1149_v13, %v1415_v47  ;;  %v486_v13 = vadd.f32 %v1492_v11, %v1415_v47  ;;  %v476_v11 = vadd.f32 %v1488_v10, %v1415_v47  ;;  %v582_v10 = vmax.f32 %v396_v4, 0.0 }
 0x17c   :  { %v1496_v15 = vpop.f32.mrf.mxu0 }
 0x17d   :  { %v491_v41 = vadd.f32 %v1415_v47, %v1496_v15  ;;  %v481_v15 = vadd.f32 %v1415_v47, %v1494_v12  ;;  %v471_v12 = vadd.f32 %v1415_v47, %v1490_v18  ;;  %v598_v39 = vmax.f32 %v476_v11, 0.0  ;;  %v772_v18 = vld [vmem:[#allocation8 + $0x78] sm:$0xff] }
 0x17e   :  { %v1152_v16 = vpop.f32.mrf.mxu0 }
 0x17f   :  { %v506_v59 = vadd.f32 %v1152_v16, %v1415_v47  ;;  %v588_v16 = vmax.f32 %v426_v3, 0.0 }
 0x180   :  { %v500_v27 = vpop.f32.mrf.mxu0 }
 0x181   :  { %v501_v49 = vadd.f32 %v1415_v47, %v500_v27  ;;  %v604_v8 = vmax.f32 %v506_v59, 0.0 }
 0x182   :  { %v1155_v28 = vpop.f32.mrf.mxu0 }
 0x183   :  { %v516_v61 = vadd.f32 %v1155_v28, %v1415_v47  ;;  %v603_v27 = vmax.f32 %v501_v49, 0.0  ;;  %v411_v28 = vadd.f32 %v1415_v47, %v1444_v29  ;;  %v401_v29 = vadd.f32 %v1415_v47, %v1435_v9 }
 0x184   :  { %v510_v30 = vpop.f32.mrf.mxu0  ;;  %v391_v9 = vadd.f32 %v1415_v47, %v1427_v63  ;;  %v769_v63 = vld [vmem:[#allocation8 + $0x60] sm:$0xff] }
 0x185   :  { %v511_v55 = vadd.f32 %v1415_v47, %v510_v30  ;;  %v606_v33 = vmax.f32 %v516_v61, 0.0  ;;  %v602_v30 = vmax.f32 %v496_v52, 0.0 }
 0x186   :  { %v1158_v31 = vpop.f32.mrf.mxu0 }
 0x187   :  { %v526_v54 = vadd.f32 %v1158_v31, %v1415_v47  ;;  %v605_v17 = vmax.f32 %v511_v55, 0.0  ;;  %v586_v31 = vmax.f32 %v416_v34, 0.0 }
 0x188   :  { %v520_v25 = vpop.f32.mrf.mxu0 }
 0x189   :  { %v521_v57 = vadd.f32 %v1415_v47, %v520_v25  ;;  %v608_v62 = vmax.f32 %v526_v54, 0.0  ;;  %v601_v25 = vmax.f32 %v491_v41, 0.0  ;;  %v762_v54 = vld [vmem:[#allocation8 + $0x28] sm:$0xff] }
 0x18a   :  { %v1161_v32 = vpop.f32.mrf.mxu0 }
 0x18b   :  { %v536_v23 = vadd.f32 %v1161_v32, %v1415_v47  ;;  %v607_v20 = vmax.f32 %v521_v57, 0.0  ;;  %v585_v32 = vmax.f32 %v411_v28, 0.0  ;;  %v758_v57 = vld [vmem:[#allocation8 + $0x8] sm:$0xff] }
 0x18c   :  { %v530_v42 = vpop.f32.mrf.mxu0 }
 0x18d   :  { %v531_v51 = vadd.f32 %v1415_v47, %v530_v42  ;;  %v610_v38 = vmax.f32 %v536_v23, 0.0  ;;  %v600_v42 = vmax.f32 %v486_v13, 0.0  ;;  %v581_v23 = vmax.f32 %v391_v9, 0.0 }
 0x18e   :  { %v1164_v26 = vpop.f32.mrf.mxu0 }
 0x18f   :  { %v546_v44 = vadd.f32 %v1164_v26, %v1415_v47  ;;  %v609_v35 = vmax.f32 %v531_v51, 0.0  ;;  %v599_v26 = vmax.f32 %v481_v15, 0.0  ;;  %v766_v51 = vld [vmem:[#allocation8 + $0x48] sm:$0xff] }
 0x190   :  { %v540_v46 = vpop.f32.mrf.mxu0 }
 0x191   :  { %v612_v48 = vmax.f32 %v546_v44, 0.0  ;;  %v541_v40 = vadd.f32 %v1415_v47, %v540_v46  ;;  %v583_v44 = vmax.f32 %v401_v29, 0.0  ;;  %v597_v46 = vmax.f32 %v471_v12, 0.0  ;;  %v770_v47 = vld [vmem:[#allocation8 + $0x68] sm:$0xff] }
 0x193   :  { %v611_v37 = vmax.f32 %v541_v40, 0.0  ;;  %985 = vmatprep.subr.mxu1 %v612_v48  ;;  %v1323_v48 = vmov 0.0   ;;  %v771_v40 = vld [vmem:[#allocation8 + $0x70] sm:$0xff] }
 0x194   :  { %986 = vmatpush3.msra.mxu1 %v596_v50  ;;  %v767_v50 = vld [vmem:[#allocation8 + $0x50] sm:$0xff] }
 0x195   :  { %987 = vmatprep.subr.mxu1 %v611_v37  ;;  %v765_v37 = vld [vmem:[#allocation8 + $0x40] sm:$0xff] }
 0x196   :  { %988 = vmatpush3.msra.mxu1 %v595_v53  ;;  %v763_v53 = vld [vmem:[#allocation8 + $0x30] sm:$0xff] }
 0x197   :  { %989 = vmatprep.subr.mxu1 %v610_v38  ;;  %v761_v38 = vld [vmem:[#allocation8 + $0x20] sm:$0xff] }
 0x198   :  { %990 = vmatpush3.msra.mxu1 %v594_v56  ;;  %v759_v56 = vld [vmem:[#allocation8 + $0x10] sm:$0xff] }
 0x199   :  { %991 = vmatprep.subr.mxu1 %v609_v35  ;;  %v757_v35 = vld [vmem:[#allocation8] sm:$0xff] }
 0x19a   :  { %992 = vmatpush3.msra.mxu1 %v593_v60 }
 0x19b   :  { %993 = vmatprep.subr.mxu1 %v608_v62 }
 0x19c   :  { %994 = vmatpush3.msra.mxu1 %v592_v0 }
 0x19d   :  { %995 = vmatprep.subr.mxu1 %v607_v20  ;;  %v869_v20 = vld [vmem:[%s1558_s5] ss:$0 sm:$0xff] }
 0x19e   :  { %996 = vmatpush3.msra.mxu1 %v591_v2 }
 0x19f   :  { %997 = vmatprep.subr.mxu1 %v606_v33 }
 0x1a0   :  { %998 = vmatpush3.msra.mxu1 %v590_v5 }
 0x1a1   :  { %999 = vmatprep.subr.mxu1 %v605_v17 }
 0x1a2   :  { %1000 = vmatpush3.msra.mxu1 %v589_v7 }
 0x1a3   :  { %1001 = vmatprep.subr.mxu1 %v604_v8 }
 0x1a4   :  { %1002 = vmatpush3.msra.mxu1 %v588_v16 }
 0x1a5   :  { %1003 = vmatprep.subr.mxu1 %v603_v27 }
 0x1a6   :  { %1004 = vmatpush3.msra.mxu1 %v587_v45 }
 0x1a7   :  { %1005 = vmatprep.subr.mxu1 %v602_v30 }
 0x1a8   :  { %1006 = vmatpush3.msra.mxu1 %v586_v31 }
 0x1a9   :  { %1007 = vmatprep.subr.mxu1 %v601_v25 }
 0x1aa   :  { %1008 = vmatpush3.msra.mxu1 %v585_v32 }
 0x1ab   :  { %1009 = vmatprep.subr.mxu1 %v600_v42 }
 0x1ac   :  { %1010 = vmatpush3.msra.mxu1 %v584_v43 }
 0x1ad   :  { %1011 = vmatprep.subr.mxu1 %v599_v26 }
 0x1ae   :  { %1012 = vmatpush3.msra.mxu1 %v583_v44 }
 0x1af   :  { %1013 = vmatprep.subr.mxu1 %v598_v39 }
 0x1b0   :  { %1014 = vmatpush3.msra.mxu1 %v582_v10 }
 0x1b1   :  { %1015 = vmatprep.subr.mxu1 %v597_v46 }
 0x1b2   :  { %1016 = vmatpush3.msra.mxu1 %v581_v23 }
 0x1b3   :  { %752 = vmatmul.mubr.f32.vlgmr.msra.gmra.mxu1 %v615_v58  ;;  %1165 = vmatprep.subr.mxu1 %v1323_v48 }
 0x1b4   :  { %1166 = vmatpush3.msra.mxu1 %v772_v18  ;;  %1197 = vmatprep.mubr.msk.f32.mxu1 %vm1324_vm0, %v1323_v48 }
 0x1b5   :  { %1167 = vmatprep.subr.mxu1 %v1323_v48 }
 0x1b6   :  { %1168 = vmatpush3.msra.mxu1 %v771_v40 }
 0x1b7   :  { %1169 = vmatprep.subr.mxu1 %v1323_v48 }
 0x1b8   :  { %1170 = vmatpush3.msra.mxu1 %v770_v47 }
 0x1b9   :  { %1171 = vmatprep.subr.mxu1 %v1323_v48 }
 0x1ba   :  { %1172 = vmatpush3.msra.mxu1 %v769_v63 }
 0x1bb   :  { %1173 = vmatprep.subr.mxu1 %v1323_v48 }
 0x1bc   :  { %1174 = vmatpush3.msra.mxu1 %v768_v24 }
 0x1bd   :  { %1175 = vmatprep.subr.mxu1 %v1323_v48 }
 0x1be   :  { %1176 = vmatpush3.msra.mxu1 %v767_v50 }
 0x1bf   :  { %1177 = vmatprep.subr.mxu1 %v1323_v48 }
 0x1c0   :  { %1178 = vmatpush3.msra.mxu1 %v766_v51 }
 0x1c1   :  { %1179 = vmatprep.subr.mxu1 %v1323_v48 }
 0x1c2   :  { %1180 = vmatpush3.msra.mxu1 %v765_v37 }
 0x1c3   :  { %1181 = vmatprep.subr.mxu1 %v1323_v48 }
 0x1c4   :  { %1182 = vmatpush3.msra.mxu1 %v764_v21 }
 0x1c5   :  { %1183 = vmatprep.subr.mxu1 %v1323_v48 }
 0x1c6   :  { %1184 = vmatpush3.msra.mxu1 %v763_v53 }
 0x1c7   :  { %1185 = vmatprep.subr.mxu1 %v1323_v48 }
 0x1c8   :  { %1186 = vmatpush3.msra.mxu1 %v762_v54 }
 0x1c9   :  { %1187 = vmatprep.subr.mxu1 %v1323_v48 }
 0x1ca   :  { %1188 = vmatpush3.msra.mxu1 %v761_v38 }
 0x1cb   :  { %1189 = vmatprep.subr.mxu1 %v1323_v48 }
 0x1cc   :  { %1190 = vmatpush3.msra.mxu1 %v760_v22 }
 0x1cd   :  { %1191 = vmatprep.subr.mxu1 %v1323_v48 }
 0x1ce   :  { %1192 = vmatpush3.msra.mxu1 %v759_v56 }
 0x1cf   :  { %1193 = vmatprep.subr.mxu1 %v1323_v48 }
 0x1d0   :  { %1194 = vmatpush3.msra.mxu1 %v758_v57 }
 0x1d1   :  { %1195 = vmatprep.subr.mxu1 %v1323_v48 }
 0x1d2   :  { %1196 = vmatpush3.msra.mxu1 %v757_v35 }
 0x233   :  { %v982_v19 = vpop.f32.mrf.mxu1 }
 0x235   :  { %v983_v60 = vpop.f32.mrf.mxu1 }
 0x236   :  { %v984_v36 = vadd.f32 %v983_v60, %v982_v19 }
 0x273   :  { %v1017_v61 = vpop.f32.mrf.mxu1 }
 0x275   :  { %v1018_v62 = vpop.f32.mrf.mxu1 }
 0x276   :  { %v1019_v0 = vadd.f32 %v1018_v62, %v1017_v61 }
 0x278   :  { %v754_v55 = vadd.f32 %v1019_v0, %v984_v36 }
 0x27a   :  { %1198 = vmatmul.mubr.f32.vlgmr.msra.gmra.mxu1 %v754_v55 }
 0x33a   :  { %v846_v1 = vpop.f32.mrf.mxu1 }
 0x33b   :  { %v847_v2 = vadd.f32 %v869_v20, %v846_v1 }
 0x33c   :  { %v1199_v59 = vpop.f32.mrf.mxu1 }
 0x33d   :  { %850 = vst [vmem:[#allocation10] sm:$0xff] %v847_v2 }
 0x33e   :  { %1300 = shalt.err (!%p1297_p10)
}
 0x33f   :  { %860 = dma.vmem_to_hbm [thread:$0]  %s858_s19, 128, %s1559_s6, [#allocation4]  }
 0x340   :  { %1315 = dma.done.wait [#allocation4], 128  }
 0x341   :  { %1316 = vsyncadd [#allocation4], 4294967168 }
 0x342   :  { %864 = vsyncpa [#allocation3], 1 }
 0x343   :  { %865 = vsyncpa [#allocation6], 1 }
 0x344   :  { %866 = vsyncpa [#allocation9], 1 }
 0x345   :  { %867 = vsyncpa [#allocation4], 1 }

</bundles_post_ra>
